<compile_context>
chip_gen: v6e
topology: v6e:2x2x1
jax: 0.10.0
libtpu: 0.0.40
codegen_flags: <defaults>
</compile_context>

<pallas_src>
import functools

import jax
import jax.numpy as jnp
from jax.experimental import pallas as pl
from jax.experimental.pallas import tpu as pltpu

_MIB = 1024 * 1024


def _rmsnorm_kernel(x_ref, w_ref, o_ref, *, eps, low_precision_out):
    # x_ref: (row_tile, hidden) block; w_ref: (1, hidden) weight row.
    x = x_ref[...]
    xf = x.astype(jnp.float32)
    ms = jnp.mean(xf * xf, axis=-1, keepdims=True)
    inv = jax.lax.rsqrt(ms + eps)                       # EUP rsqrt, f32
    wf = 1.0 + w_ref[...].astype(jnp.float32)
    if low_precision_out:
        # 16-bit inputs: do the final scaling multiply in the input dtype.
        scale = (inv * wf).astype(x_ref.dtype)
        o_ref[...] = (x * scale).astype(o_ref.dtype)
    else:
        o_ref[...] = (xf * inv * wf).astype(o_ref.dtype)


def _vmem_capacity_bytes():
    """Best-effort physical VMEM size; fall back to the smallest (v7x) value."""
    try:
        info = pltpu.get_tpu_info()
        cap = getattr(info, "vmem_capacity_bytes", None)
        if cap is not None and int(cap) > 0:
            return int(cap)
    except Exception:
        pass
    return 64 * _MIB


def _round_up(n, m):
    return ((n + m - 1) // m) * m


def _sublane_multiple(itemsize):
    # Minimum second-minor tile: 8 for 32-bit, 16 for 16-bit, 32 for 8-bit dtypes.
    return {1: 32, 2: 16}.get(itemsize, 8)


def _choose_row_tile(rows, hidden, itemsize, vmem_budget):
    """Sublane-aligned row tile sized by a per-step byte target under a VMEM budget."""
    sub = _sublane_multiple(itemsize)
    # Bytes resident per row during a step: 2x-buffered in + out blocks + f32 temps.
    per_row = 4 * hidden * itemsize + 2 * hidden * 4
    fit = max(sub, (vmem_budget // per_row) // sub * sub)
    # Per-step byte target (~8 MiB of in+out traffic) to hide ~0.35us step overhead.
    target_rows = _round_up(pl.cdiv(8 * _MIB, 2 * hidden * itemsize), sub)
    tile = min(int(fit), int(target_rows))
    rows_up = _round_up(rows, sub)        # don't over-pad tiny inputs
    return max(sub, min(tile, rows_up)), sub


def gemma_rmsnorm(x, weight, eps=1e-6, row_tile=None):
    """x: (..., hidden), weight: (hidden,). Returns same shape/dtype as x."""
    orig_shape = x.shape
    hidden = orig_shape[-1]
    x2d = x.reshape(-1, hidden)
    rows = x2d.shape[0]
    itemsize = jnp.dtype(x.dtype).itemsize

    vmem_cap = _vmem_capacity_bytes()
    small_vmem = vmem_cap <= 96 * _MIB                 # v7x-like (or unknown)
    vmem_budget = 40 * _MIB if small_vmem else 96 * _MIB
    vmem_cap_limit = 48 * _MIB if small_vmem else 100 * _MIB

    if row_tile is None:
        row_tile, sub = _choose_row_tile(rows, hidden, itemsize, vmem_budget)
    else:
        sub = _sublane_multiple(itemsize)
        row_tile = max(sub, _round_up(int(row_tile), sub))

    # On 2-TensorCore parts, make sure the "parallel" grid has >= 2 steps so both
    # cores get work (single-step grids run on one TC only).
    if small_vmem and pl.cdiv(rows, row_tile) < 2 and rows > sub:
        row_tile = max(sub, _round_up(pl.cdiv(rows, 2), sub))

    num_tiles = pl.cdiv(rows, row_tile)

    w2d = weight.reshape(1, hidden)
    w_itemsize = jnp.dtype(weight.dtype).itemsize

    # Scoped-VMEM request: double-buffered in + out blocks, f32 intermediates,
    # weight block, plus margin for Mosaic-internal scratch.
    block_bytes = row_tile * hidden * itemsize
    vmem_limit = (4 * block_bytes
                  + 2 * row_tile * hidden * 4
                  + 4 * hidden * max(w_itemsize, 4)
                  + 4 * _MIB)
    vmem_limit = int(min(vmem_cap_limit, max(32 * _MIB, vmem_limit)))

    cost = pl.CostEstimate(
        flops=5 * rows * hidden,
        transcendentals=rows,
        bytes_accessed=2 * rows * hidden * itemsize + hidden * w_itemsize,
    )

    kernel = functools.partial(
        _rmsnorm_kernel, eps=float(eps), low_precision_out=(itemsize == 2))

    out = pl.pallas_call(
        kernel,
        out_shape=jax.ShapeDtypeStruct((rows, hidden), x.dtype),
        grid_spec=pltpu.PrefetchScalarGridSpec(
            num_scalar_prefetch=0,
            grid=(num_tiles,),
            in_specs=[
                pl.BlockSpec((row_tile, hidden), lambda i: (i, 0)),
                pl.BlockSpec((1, hidden), lambda i: (0, 0)),
            ],
            out_specs=pl.BlockSpec((row_tile, hidden), lambda i: (i, 0)),
        ),
        compiler_params=pltpu.CompilerParams(
            dimension_semantics=("parallel",),
            vmem_limit_bytes=vmem_limit,
        ),
        cost_estimate=cost,
    )(x2d, w2d)

    return out.reshape(orig_shape)


def gemma_rmsnorm_ref(x, weight, eps=1e-6):
    xf = x.astype(jnp.float32)
    normed = xf * jax.lax.rsqrt(jnp.mean(xf * xf, axis=-1, keepdims=True) + eps)
    out = normed * (1.0 + weight.astype(jnp.float32))
    return out.astype(x.dtype)


if __name__ == "__main__":
    key = jax.random.PRNGKey(0)
    # Small but lane-dense; rows (= 2*7 = 14) is not a tile multiple so the
    # masked partial-last-block path is exercised.
    batch, seq, hidden = 2, 7, 256
    k1, k2 = jax.random.split(key)
    x = jax.random.normal(k1, (batch, seq, hidden), dtype=jnp.float32)
    # Module init is zeros(dim); use small deterministic values so the
    # (1 + weight) scale is non-trivial.
    weight = 0.01 * jax.random.normal(k2, (hidden,), dtype=jnp.float32)

    out = jax.block_until_ready(gemma_rmsnorm(x, weight))
    ref = gemma_rmsnorm_ref(x, weight)
    assert out.shape == x.shape and out.dtype == x.dtype
    assert jnp.allclose(out, ref, atol=1e-5, rtol=1e-5)

    # Also exercise a bf16 input (16-row sublane multiple, low-precision scale path).
    xb = x.astype(jnp.bfloat16)
    outb = jax.block_until_ready(gemma_rmsnorm(xb, weight))
    refb = gemma_rmsnorm_ref(xb, weight)
    assert outb.shape == xb.shape and outb.dtype == xb.dtype
    assert jnp.allclose(outb.astype(jnp.float32), refb.astype(jnp.float32),
                        atol=2e-2, rtol=2e-2)

    print("KERNEL_OK")
</pallas_src>

<mosaic_0001>
module attributes {stable_mosaic.version = 11 : i64} {
  func.func @_rmsnorm_kernel(%arg0: i32, %arg1: memref<8x256xf32, #tpu.memory_space<vmem>>, %arg2: memref<1x256xf32, #tpu.memory_space<vmem>>, %arg3: memref<8x256xf32, #tpu.memory_space<vmem>>) attributes {dimension_semantics = [#tpu.dimension_semantics<parallel>], iteration_bounds = array<i64: 2>, scalar_prefetch = 0 : i64, scratch_operands = 0 : i64, tpu.core_type = #tpu.core_type<tc>, window_params = [{transform_indices = @transform_0, window_bounds = array<i64: 8, 256>}, {pipeline_mode = #tpu.pipeline_mode<synchronous>, transform_indices = @transform_1, window_bounds = array<i64: 1, 256>}, {transform_indices = @transform_2, window_bounds = array<i64: 8, 256>}]} {
    %c0 = arith.constant 0 : index
    %c0_0 = arith.constant 0 : index
    %0 = vector.load %arg1[%c0, %c0_0] : memref<8x256xf32, #tpu.memory_space<vmem>>, vector<8x256xf32>
    %1 = arith.mulf %0, %0 : vector<8x256xf32>
    %cst = arith.constant dense<0.000000e+00> : vector<8xf32>
    %2 = vector.multi_reduction <add>, %1, %cst [1] : vector<8x256xf32> to vector<8xf32>
    %3 = vector.shape_cast %2 : vector<8xf32> to vector<8x1xf32>
    %cst_1 = arith.constant 2.560000e+02 : f32
    %4 = vector.broadcast %cst_1 : f32 to vector<8x1xf32>
    %5 = arith.divf %3, %4 : vector<8x1xf32>
    %cst_2 = arith.constant 9.99999997E-7 : f32
    %6 = vector.broadcast %cst_2 : f32 to vector<8x1xf32>
    %7 = arith.addf %5, %6 : vector<8x1xf32>
    %8 = math.rsqrt %7 : vector<8x1xf32>
    %c0_3 = arith.constant 0 : index
    %c0_4 = arith.constant 0 : index
    %9 = vector.load %arg2[%c0_3, %c0_4] : memref<1x256xf32, #tpu.memory_space<vmem>>, vector<1x256xf32>
    %cst_5 = arith.constant 1.000000e+00 : f32
    %10 = vector.broadcast %cst_5 : f32 to vector<1x256xf32>
    %11 = arith.addf %10, %9 : vector<1x256xf32>
    %12 = vector.broadcast %8 : vector<8x1xf32> to vector<8x256xf32>
    %13 = arith.mulf %0, %12 : vector<8x256xf32>
    %14 = vector.broadcast %11 : vector<1x256xf32> to vector<8x256xf32>
    %15 = arith.mulf %13, %14 : vector<8x256xf32>
    %c0_6 = arith.constant 0 : index
    %c0_7 = arith.constant 0 : index
    %16 = vector.load %arg3[%c0_6, %c0_7] : memref<8x256xf32, #tpu.memory_space<vmem>>, vector<8x256xf32>
    tpu.vector_store %arg3[%c0_6, %c0_7], %15 {strides = array<i32>} : memref<8x256xf32, #tpu.memory_space<vmem>>, vector<8x256xf32>,
    return
  }
  func.func @transform_0(%arg0: i32) -> (i32, i32) {
    %c0_i32 = arith.constant 0 : i32
    %c0_i32_0 = arith.constant 0 : i32
    return %arg0, %c0_i32 : i32, i32
  }
  func.func @transform_1(%arg0: i32) -> (i32, i32) {
    %c0_i32 = arith.constant 0 : i32
    %c0_i32_0 = arith.constant 0 : i32
    %c0_i32_1 = arith.constant 0 : i32
    return %c0_i32, %c0_i32_0 : i32, i32
  }
  func.func @transform_2(%arg0: i32) -> (i32, i32) {
    %c0_i32 = arith.constant 0 : i32
    %c0_i32_0 = arith.constant 0 : i32
    return %arg0, %c0_i32 : i32, i32
  }
}

</mosaic_0001>

<bundles_post_ra>
// kernel: tpu_custom_call.1
= control target key start
LH: loop header
LB: loop body
LE: loop exit
PB: predicated region body
PF: predicated region fallthrough
CT: control target
= control target key end

     0   :  { %7 = vsyncpa [#allocation3], 0  ;;  %s689_s0 = inlined_call_operand.hbm [shape: f32[14,256], index: 0, kind: input, shape index: {}]   ;;  %s690_s1 = inlined_call_operand.hbm [shape: f32[1,256], index: 1, kind: input, shape index: {}]   ;;  %s691_s2 = inlined_call_operand.hbm [shape: f32[14,256], index: 2, kind: output, shape index: {}]  }
   0x1   :  { %9 = vsyncpa [#allocation3 + $0x1], 0 }
   0x2   :  { %10 = vsyncpa [#allocation6], 0 }
   0x3   :  { %11 = vsyncpa [#allocation4], 0 }
   0x4   :  { %13 = vsyncpa [#allocation4 + $0x1], 0  ;;  %s517_s9 = smov 0   ;;  %s519_s10 = smov 0  }
   0x5   :  { %s521_s11 = smov 0   ;;  %s523_s12 = smov 0  }
   0x6 LB: > { %s538_s13 = sadd.s32 4294967295, %s497_s12   ;;  %s298_s14 = sadd.s32 4294967294, %s497_s12   ;;  %s497_s12 = sphi %s523_s12, %s714_s12   ;;  %s493_s11 = sphi %s521_s11, %s713_s11   ;;  %s489_s10 = sphi %s519_s10, %s712_s10   ;;  %s485_s9 = sphi %s517_s9, %s711_s9  }
   0x7   : > { %p39_p0 = scmp.ne.s32.totalorder %s489_s10, %s485_s9  ;;  %p692_p1 = scmp.eq.s32.totalorder %s538_s13, 0 }
   0x8   : > { %p90_p3 = scmp.eq.s32.totalorder %s298_s14, 1  ;;  %p299_p5 = scmp.ge.s32.totalorder %s497_s12, 1 }
   0x9   : > { %p547_p4 = por %p692_p1, %p39_p0  ;;  %p97_p7 = scmp.lt.s32.totalorder %s497_s12, 3 }
   0xa   : > { %p552_p6 = por %p90_p3, %p39_p0  ;;  %s499_s18 = smov [#allocation5]  }
   0xb   : > { %s696_s15 = scalar_select %p547_p4, 1, 0 }
   0xc   : > { %s697_s16 = scalar_select %p552_p6, 1, 0 }
   0xd   : > { %p557_p8 = pnand %p299_p5, %p97_p7  ;;  %s110_s19 = sshll.u32 %s499_s18, 4  ;;  %s111_s19 = int_to_ptr.vmem [resolvable:$true] %s110_s19 }
   0xe   : > { %s565_s20 = sadd.s32 1, %s497_s12   ;;  %s26_s24 = sadd.s32 1, %s493_s11 }
   0xf   : > { %s698_s17 = scalar_select %p557_p8, 1, 0 }
  0x10   : > { %p324_p10 = pneg %p557_p8  ;;  %s23_s22 = ssub.s32 %s497_s12, %s565_s20 }
  0x11   : > { %p575_p12 = scmp.eq.s32.totalorder %s23_s22, 0  ;;  %p33_p13 = scmp.ne.s32.totalorder %s493_s11, %s489_s10 }
  0x12   : > { %p569_p11 = pnand %p324_p10, %p692_p1  ;;  %s386_s25 = scalar_lea.vmem %s111_s19, 32 }
  0x13   : > { %p387_p3 = scmp.ne.s32.totalorder %s111_s19, %s386_s25  ;;  %p394_p9 = scmp.lt.s32.totalorder %s111_s19, %s111_s19 }
  0x14   : > { %p377_p0 = pneg %p569_p11  ;;  %p395_p2 = scmp.lt.s32.totalorder %s386_s25, %s386_s25 }
  0x16   : > { %p389_p5 = pnand %p387_p3, %p377_p0  ;;  %p396_p10 = por %p395_p2, %p394_p9 }
  0x18   : > { %p390_p7 = pneg %p389_p5 }
  0x1a   : > { %p397_p1 = pnand %p396_p10, %p390_p7 }
  0x1c   : > { %400 = shalt.err (!%p397_p1)
}
  0x1d   : > { %327 = dma.hbm_to_vmem [thread:$0]  (!%p569_p11), %s690_s1, 32, %s111_s19, [#allocation6]  }
  0x1e   : > { %s592_s28 = scalar_select %p575_p12, %s493_s11, %s26_s24  }
  0x1f   : > { %p34_p1 = scmp.eq.s32.totalorder %s497_s12, 0  ;;  %p701_p2 = scmp.eq.s32.totalorder %s538_s13, 1 }
  0x20   : > { %p337_p0 = scmp.lt.s32.totalorder %s497_s12, 2  ;;  %s121_s30 = sand.u32 1, %s493_s11  }
  0x21   : > { %p600_p9 = por %p701_p2, %p33_p13  ;;  %p35_p3 = por %p34_p1, %p33_p13 }
  0x22   : > { %s302_s3 = sshll.u32 %s121_s30, 4  ;;  %s314_s4 = sshll.u32 %s497_s12, 8 }
  0x23   : > { %s702_s29 = scalar_select %p600_p9, 1, 0 }
  0x24   : > { %s613_s7 = scalar_lea.hbm %s689_s0, %s314_s4  ;;  %s125_s8 = scalar_lea.vmem [#allocation2], %s302_s3 }
  0x25   : > { %s133_s14 = sshll.u32 %s125_s8, 4  ;;  %p615_p11 = pnand %p337_p0, %p35_p3  ;;  %s134_s14 = int_to_ptr.vmem [resolvable:$true] %s133_s14 }
  0x26   : > { %s122_s19 = scalar_lea.sflag [#allocation3], %s121_s30  ;;  %s401_s21 = scalar_lea.hbm %s613_s7, 256 }
  0x27   : > { %p402_p12 = scmp.ne.s32.totalorder %s613_s7, %s401_s21  ;;  %p403_p13 = pneg %p615_p11 }
  0x28   : > { %s406_s24 = scalar_lea.hbm %s689_s0, 512  ;;  %p407_p10 = scmp.lt.s32.totalorder %s613_s7, %s689_s0 }
  0x29   : > { %p404_p5 = pnand %p403_p13, %p402_p12  ;;  %p408_p1 = scmp.lt.s32.totalorder %s406_s24, %s401_s21 }
  0x2b   : > { %p405_p7 = pneg %p404_p5  ;;  %p409_p2 = por %p408_p1, %p407_p10 }
  0x2d   : > { %p410_p0 = pnand %p409_p2, %p405_p7 }
  0x2f   : > { %413 = shalt.err (!%p410_p0)
}
  0x30   : > { %s414_s27 = scalar_lea.vmem %s134_s14, 256  ;;  %s500_s30 = smov [#allocation2]  }
  0x31   : > { %p415_p3 = scmp.ne.s32.totalorder %s134_s14, %s414_s27  ;;  %s419_s3 = sshll.u32 %s500_s30, 4  ;;  %s420_s3 = int_to_ptr.vmem [resolvable:$false] %s419_s3 }
  0x32   : > { %s421_s4 = scalar_lea.vmem %s420_s3, 512  ;;  %p422_p12 = scmp.lt.s32.totalorder %s134_s14, %s420_s3 }
  0x33   : > { %p417_p6 = pnand %p415_p3, %p403_p13  ;;  %p423_p5 = scmp.lt.s32.totalorder %s421_s4, %s414_s27 }
  0x35   : > { %p418_p9 = pneg %p417_p6  ;;  %p424_p4 = por %p423_p5, %p422_p12 }
  0x37   : > { %p425_p8 = pnand %p424_p4, %p418_p9 }
  0x39   : > { %428 = shalt.err (!%p425_p8)
}
  0x3a   : > { %331 = dma.hbm_to_vmem [thread:$0]  (!%p615_p11), %s613_s7, 256, %s134_s14, %s122_s19  }
  0x3b   : > { %p704_p7 = scmp.ne.s32.totalorder %s698_s17, 0 }
  0x3c   : > { %s636_s5 = sand.u32 (!%p704_p7), 1, %s489_s10   ;;  %p705_p6 = scmp.ne.s32.totalorder (!%p704_p7), %s696_s15, 0 }
  0x3d   : > { %142 = sbr.rel (%p704_p7) target bundleno = 248 (0xf8), region = 28  ;;  %s306_s6 = sshll.u32 (!%p704_p7), %s636_s5, 4 }
  0x3e   : > { %s145_s8 = scalar_lea.sflag (!%p704_p7), [#allocation3], %s636_s5  ;;  %s148_s21 = scalar_lea.vmem (!%p704_p7), [#allocation2], %s306_s6 }
  0x42   : > { %472 = dma.done.wait (%p705_p6), %s145_s8, 256  }
  0x43   : > { %474 = vsyncadd (%p705_p6), %s145_s8, 4294967040  ;;  %p706_p4 = scmp.eq.s32.totalorder %s538_s13, 0 }
  0x45   : > { %476 = dma.done.wait (%p706_p4), [#allocation6], 32   ;;  %p707_p8 = pmov %p706_p4 }
  0x46   : > { %v173_v0 = vld [vmem:[%s148_s21] sm:$0xff]  ;;  %v174_v1 = vld [vmem:[%s148_s21 + $0x8] sm:$0xff]  ;;  %v189_v8 = vlaneseq  ;;  %s315_s15 = sshll.u32 %s538_s13, 8  ;;  %s172_s17 = scalar_lea.vmem [#allocation7], %s306_s6 }
  0x47   : > { %478 = vsyncadd (%p707_p8), [#allocation6], 4294967264  ;;  %v175_v2 = vmul.f32 %v173_v0, %v173_v0  ;;  %v176_v3 = vmul.f32 %v174_v1, %v174_v1  ;;  %v184_v10 = vld [vmem:[#allocation5] sm:$0x3]  ;;  %s218_s7 = sshll.u32 %s172_s17, 4  ;;  %s652_s19 = scalar_lea.hbm %s691_s2, %s315_s15  ;;  %s219_s7 = int_to_ptr.vmem [resolvable:$true] %s218_s7 }
  0x48   : > { %v190_v9 = vshrl.u32 %v189_v8, 7  ;;  %v185_v11 = vadd.f32 1.0, %v184_v10  ;;  %s204_s22 = scalar_lea.sflag [#allocation4], %s636_s5  ;;  %s429_s23 = scalar_lea.vmem %s219_s7, 256 }
  0x49   : > { %v177_v4 = vadd.f32 %v176_v3, %v175_v2  ;;  %p430_p9 = scmp.ne.s32.totalorder %s219_s7, %s429_s23  ;;  %p708_p11 = scmp.ne.s32.totalorder %s702_s29, 0 }
  0x4a   : > { %v191_v12 = vsub.s32 0, %v190_v9  ;;  %v195_v13 = vsub.s32 1, %v190_v9  ;;  %s501_s13 = smov [#allocation7]  }
  0x4b   : > { %178 = vadd.xlane.f32.xlu0 %v177_v4  ;;  %p431_p13 = pnand %p430_p9, %p708_p11  ;;  %s433_s24 = sshll.u32 %s501_s13, 4  ;;  %s434_s24 = int_to_ptr.vmem [resolvable:$false] %s433_s24 }
  0x4c   : > { %v192_v14 = vrot.slane %v185_v11, %v191_v12  ;;  %v196_v15 = vrot.slane %v185_v11, %v195_v13  ;;  %s435_s25 = scalar_lea.vmem %s434_s24, 512  ;;  %p436_p1 = scmp.lt.s32.totalorder %s219_s7, %s434_s24 }
  0x4d   : > { %p432_p10 = pneg %p431_p13  ;;  %p437_p2 = scmp.lt.s32.totalorder %s435_s25, %s429_s23 }
  0x4f   : > { %p438_p0 = por %p437_p2, %p436_p1 }
  0x51   : > { %p439_p3 = pnand %p438_p0, %p432_p10 }
  0xd4   : > { %v179_v5 = vpop.xlane.xlu0 %178 }
  0xd5   : > { %v181_v6 = vmul.f32 0.00390625, %v179_v5 }
  0xd7   : > { %v182_v7 = vadd.f32 1e-06, %v181_v6 }
  0xd9   : > { %373 = vrsqrt.f32 %v182_v7 }
  0xe6   : > { %v374_v16 = vpop.eup %373 }
  0xe7   : > { %v186_v17 = vmul.f32 %v374_v16, %v173_v0  ;;  %v187_v18 = vmul.f32 %v374_v16, %v174_v1 }
  0xe9   : > { %v199_v19 = vmul.f32 %v192_v14, %v186_v17  ;;  %v200_v20 = vmul.f32 %v196_v15, %v187_v18 }
  0xeb   : > { %201 = vst [vmem:[%s172_s17] sm:$0xff] %v199_v19  ;;  %202 = vst [vmem:[%s172_s17 + $0x8] sm:$0xff] %v200_v20 }
  0xec   : > { %442 = shalt.err (!%p439_p3)
}
  0xed   : > { %s443_s26 = scalar_lea.hbm %s652_s19, 256  ;;  %s447_s3 = scalar_lea.hbm %s691_s2, 512 }
  0xee   : > { %p444_p12 = scmp.ne.s32.totalorder %s652_s19, %s443_s26  ;;  %p448_p6 = scmp.lt.s32.totalorder %s652_s19, %s691_s2 }
  0xef   : > { %p449_p4 = scmp.lt.s32.totalorder %s447_s3, %s443_s26 }
  0xf0   : > { %p445_p5 = pnand %p444_p12, %p708_p11 }
  0xf1   : > { %p450_p8 = por %p449_p4, %p448_p6 }
  0xf2   : > { %p446_p7 = pneg %p445_p5 }
  0xf4   : > { %p451_p9 = pnand %p450_p8, %p446_p7 }
  0xf6   : > { %454 = shalt.err (!%p451_p9)
}
  0xf7   : > { %322 = dma.vmem_to_hbm [thread:$0]  (%p708_p11), %s219_s7, 256, %s652_s19, %s204_s22  }
  0xf8 PF: > { %s230_s6 = sand.u32 1, %s485_s9   ;;  %p709_p13 = scmp.ne.s32.totalorder %s697_s16, 0 }
  0xf9   : > { %p710_p10 = scmp.ge.s32.totalorder %s497_s12, 2  ;;  %s231_s8 = scalar_lea.sflag [#allocation4], %s230_s6 }
  0xfb   : > { %p333_p1 = pnand %p710_p10, %p709_p13 }
  0xfd   : > { %p334_p2 = pneg %p333_p1 }
  0xff   : > { %480 = dma.done.wait (%p334_p2), %s231_s8, 256  }
 0x100   : > { %482 = vsyncadd (%p334_p2), %s231_s8, 4294967040  ;;  %p16_p0 = scmp.ge.s32.totalorder %s565_s20, 4   ;;  %s711_s9 = smov %s489_s10 }
 0x101   : > { %s712_s10 = smov %s493_s11  ;;  %s713_s11 = smov %s592_s28 }
 0x102   : > { %s714_s12 = smov %s565_s20  ;;  %18 = sbr.rel (!%p16_p0) target bundleno = 6 (0x6), region = 77 }
 0x107   :  { %236 = vsyncpa [#allocation3], 1 }
 0x108   :  { %238 = vsyncpa [#allocation3 + $0x1], 1 }
 0x109   :  { %239 = vsyncpa [#allocation6], 1 }
 0x10a   :  { %240 = vsyncpa [#allocation4], 1 }
 0x10b   :  { %242 = vsyncpa [#allocation4 + $0x1], 1 }

</bundles_post_ra>
